<compile_context>
chip_gen: v7x
topology: tpu7x:2x2x1
jax: 0.10.0
libtpu: 0.0.40
codegen_flags: <defaults>
</compile_context>

<pallas_src>
import jax
import jax.numpy as jnp
from jax.experimental import pallas as pl
from jax.experimental.pallas import tpu as pltpu


def autoencoder_kernel(p_ref, x_ref, o_ref):
    # p_ref: SMEM f32[7] = [w1_00, w1_01, b1_0, w2_00, w2_10, b2_0, b2_1]
    # x_ref / o_ref: VMEM (TS, 128) interleaved: even lanes = feature 0, odd = feature 1
    w1_00 = p_ref[0]
    w1_01 = p_ref[1]
    b1_0 = p_ref[2]
    w2_00 = p_ref[3]
    w2_10 = p_ref[4]
    b2_0 = p_ref[5]
    b2_1 = p_ref[6]

    v = x_ref[...].astype(jnp.float32)                      # (TS, 128)
    lane = jax.lax.broadcasted_iota(jnp.int32, v.shape, 1)  # lane index
    is_even = (lane % 2) == 0

    # Deinterleave via single-lane rotations (XLU; free slot next to the VPU FMAs).
    # roll(v, 1)[l]   = v[l-1]  -> x0 for odd lanes
    # roll(v, 127)[l] = v[l+1]  -> x1 for even lanes
    # (wrap-around values at the row edges are never selected: lane 0 is even,
    #  lane 127 is odd, so the masked-out branch takes the wrapped value.)
    x0 = jnp.where(is_even, v, pltpu.roll(v, shift=1, axis=1))
    x1 = jnp.where(is_even, pltpu.roll(v, shift=127, axis=1), v)

    # encoder: h = x @ W1^T + b1  (hidden dim = 1)  -- pure VPU FMAs
    h = x0 * w1_00 + x1 * w1_01 + b1_0

    # decoder: y = h @ W2^T + b2  (out dim = 2), written interleaved
    y = jnp.where(is_even, h * w2_00 + b2_0, h * w2_10 + b2_1)
    o_ref[...] = y.astype(o_ref.dtype)


def autoencoder_forward(
    x, w1, b1, w2, b2,
    *,
    max_tile_rows=16384,          # rows of the (R, 128) view per block (8 MiB f32 blocks)
    min_rows_for_pallas=512,      # below this, plain XLA fusion is strictly cheaper
    vmem_limit_bytes=48 * 1024 * 1024,
):
    """x: (N, 2); w1: (1, 2); b1: (1,); w2: (2, 1); b2: (2,) -> (N, 2)."""
    N, F_in = x.shape
    assert F_in == 2 and w1.shape == (1, 2) and w2.shape == (2, 1)

    # Small-N fast path (also handles N == 0): launch + pad overhead would dominate.
    if N < min_rows_for_pallas:
        h = x @ w1.T + b1
        return h @ w2.T + b2

    # Pack all parameters into one small f32 vector for SMEM scalar prefetch.
    params = jnp.concatenate(
        [w1.reshape(-1), b1.reshape(-1), w2.reshape(-1), b2.reshape(-1)]
    ).astype(jnp.float32)                                   # (7,)

    # Flat interleaved view: [x00, x01, x10, x11, ...]  (free reshape, row-major).
    total = 2 * N
    R = pl.cdiv(total, 128)                                 # rows of the (R, 128) view
    padded = R * 128
    x_flat = x.reshape(total)
    if padded != total:                                     # tiny lane-alignment pad only
        x_flat = jnp.pad(x_flat, (0, padded - total))
    x2d = x_flat.reshape(R, 128)                            # fully dense (8,128)-tileable

    # Tile selection: single full-extent block when it fits, else big multiple-of-8
    # row tiles (the last, possibly partial, block is masked by Pallas).
    max_tile_rows = max(8, (int(max_tile_rows) // 8) * 8)
    TS = R if R <= max_tile_rows else max_tile_rows
    n_tiles = pl.cdiv(R, TS)

    grid_spec = pltpu.PrefetchScalarGridSpec(
        num_scalar_prefetch=1,
        grid=(n_tiles,),
        in_specs=[pl.BlockSpec((TS, 128), lambda i, p: (i, 0))],
        out_specs=pl.BlockSpec((TS, 128), lambda i, p: (i, 0)),
    )

    out2d = pl.pallas_call(
        autoencoder_kernel,
        out_shape=jax.ShapeDtypeStruct((R, 128), x.dtype),
        grid_spec=grid_spec,
        compiler_params=pltpu.CompilerParams(
            dimension_semantics=("parallel",),
            vmem_limit_bytes=vmem_limit_bytes,
        ),
    )(params, x2d)

    out_flat = out2d.reshape(padded)
    if padded != total:
        out_flat = out_flat[:total]
    return out_flat.reshape(N, 2)


if __name__ == "__main__":
    key = jax.random.PRNGKey(0)
    k_x, k_w1, k_b1, k_w2, k_b2 = jax.random.split(key, 5)

    # Deterministic params mimicking nn.Linear's uniform(-1/sqrt(in), 1/sqrt(in)) init.
    w1 = jax.random.uniform(k_w1, (1, 2), jnp.float32,
                            -1.0 / jnp.sqrt(2.0), 1.0 / jnp.sqrt(2.0))
    b1 = jax.random.uniform(k_b1, (1,), jnp.float32,
                            -1.0 / jnp.sqrt(2.0), 1.0 / jnp.sqrt(2.0))
    w2 = jax.random.uniform(k_w2, (2, 1), jnp.float32, -1.0, 1.0)
    b2 = jax.random.uniform(k_b2, (2,), jnp.float32, -1.0, 1.0)

    def reference(x):
        return (x @ w1.T + b1) @ w2.T + b2   # same two-step affine order

    # 1) Kernel path, aligned batch (2N % 128 == 0): zero-copy reshape in/out, 1 tile.
    x_a = jax.random.normal(k_x, (2048, 2), dtype=jnp.float32)
    out_a = jax.block_until_ready(autoencoder_forward(x_a, w1, b1, w2, b2))
    assert out_a.shape == (2048, 2)
    assert jnp.allclose(out_a, reference(x_a), atol=1e-5, rtol=1e-5), "mismatch (aligned)"

    # 2) Kernel path, unaligned batch (exercises the small lane-alignment pad + tail slice).
    x_b = jax.random.normal(k_x, (1000, 2), dtype=jnp.float32)
    out_b = jax.block_until_ready(autoencoder_forward(x_b, w1, b1, w2, b2))
    assert jnp.allclose(out_b, reference(x_b), atol=1e-5, rtol=1e-5), "mismatch (unaligned)"

    # 3) Kernel path, forced multi-tile grid with a partial last block
    #    (exercises pipelining across grid steps and edge masking).
    x_c = jax.random.normal(k_x, (1250, 2), dtype=jnp.float32)
    out_c = jax.block_until_ready(
        autoencoder_forward(x_c, w1, b1, w2, b2, max_tile_rows=8))
    assert jnp.allclose(out_c, reference(x_c), atol=1e-5, rtol=1e-5), "mismatch (multi-tile)"

    # 4) Small-N fast path (plain XLA fusion; no kernel launch).
    x_d = jax.random.normal(k_x, (8, 2), dtype=jnp.float32)
    out_d = jax.block_until_ready(autoencoder_forward(x_d, w1, b1, w2, b2))
    assert jnp.allclose(out_d, reference(x_d), atol=1e-5, rtol=1e-5), "mismatch (small-N)"

    print("KERNEL_OK")
</pallas_src>

<mosaic_0001>
module attributes {stable_mosaic.version = 11 : i64} {
  func.func @autoencoder_kernel(%arg0: i32, %arg1: memref<7xf32, #tpu.memory_space<smem>>, %arg2: memref<32x128xf32, #tpu.memory_space<vmem>>, %arg3: memref<32x128xf32, #tpu.memory_space<vmem>>) attributes {dimension_semantics = [#tpu.dimension_semantics<parallel>], iteration_bounds = array<i64: 1>, scalar_prefetch = 1 : i64, scratch_operands = 0 : i64, tpu.core_type = #tpu.core_type<tc>, window_params = [{transform_indices = @transform_0, window_bounds = array<i64: 32, 128>}, {transform_indices = @transform_1, window_bounds = array<i64: 32, 128>}]} {
    %c0 = arith.constant 0 : index
    %0 = memref.load %arg1[%c0] : memref<7xf32, #tpu.memory_space<smem>>
    %c1 = arith.constant 1 : index
    %1 = memref.load %arg1[%c1] : memref<7xf32, #tpu.memory_space<smem>>
    %c2 = arith.constant 2 : index
    %2 = memref.load %arg1[%c2] : memref<7xf32, #tpu.memory_space<smem>>
    %c3 = arith.constant 3 : index
    %3 = memref.load %arg1[%c3] : memref<7xf32, #tpu.memory_space<smem>>
    %c4 = arith.constant 4 : index
    %4 = memref.load %arg1[%c4] : memref<7xf32, #tpu.memory_space<smem>>
    %c5 = arith.constant 5 : index
    %5 = memref.load %arg1[%c5] : memref<7xf32, #tpu.memory_space<smem>>
    %c6 = arith.constant 6 : index
    %6 = memref.load %arg1[%c6] : memref<7xf32, #tpu.memory_space<smem>>
    %c0_0 = arith.constant 0 : index
    %c0_1 = arith.constant 0 : index
    %7 = vector.load %arg2[%c0_0, %c0_1] : memref<32x128xf32, #tpu.memory_space<vmem>>, vector<32x128xf32>
    %8 = tpu.iota {dimensions = array<i32: 1>} : vector<32x128xi32>
    %c2_i32 = arith.constant 2 : i32
    %c0_i32 = arith.constant 0 : i32
    %9 = arith.cmpi eq, %c2_i32, %c0_i32 : i32
    %c1_i32 = arith.constant 1 : i32
    %10 = arith.select %9, %c1_i32, %c2_i32 : i32
    %11 = vector.broadcast %10 : i32 to vector<32x128xi32>
    %12 = arith.remsi %8, %11 : vector<32x128xi32>
    %c0_i32_2 = arith.constant 0 : i32
    %13 = vector.broadcast %c0_i32_2 : i32 to vector<32x128xi32>
    %14 = arith.cmpi ne, %12, %13 : vector<32x128xi32>
    %c0_i32_3 = arith.constant 0 : i32
    %15 = vector.broadcast %c0_i32_3 : i32 to vector<32x128xi32>
    %16 = arith.cmpi slt, %12, %15 : vector<32x128xi32>
    %c0_i32_4 = arith.constant 0 : i32
    %17 = arith.cmpi slt, %10, %c0_i32_4 : i32
    %18 = vector.broadcast %17 : i1 to vector<32x128xi1>
    %19 = vector.broadcast %18 : vector<32x128xi1> to vector<32x128xi1>
    %20 = arith.xori %16, %19 : vector<32x128xi1>
    %21 = arith.andi %20, %14 : vector<32x128xi1>
    %22 = vector.broadcast %10 : i32 to vector<32x128xi32>
    %23 = arith.addi %12, %22 : vector<32x128xi32>
    %24 = arith.select %21, %23, %12 : vector<32x128xi1>, vector<32x128xi32>
    %c0_i32_5 = arith.constant 0 : i32
    %25 = vector.broadcast %c0_i32_5 : i32 to vector<32x128xi32>
    %26 = arith.cmpi eq, %24, %25 : vector<32x128xi32>
    %c1_i32_6 = arith.constant 1 : i32
    %27 = tpu.dynamic_rotate %7 by %c1_i32_6 dim 1 : vector<32x128xf32>, i32 -> vector<32x128xf32>
    %28 = arith.select %26, %7, %27 : vector<32x128xi1>, vector<32x128xf32>
    %c127_i32 = arith.constant 127 : i32
    %29 = tpu.dynamic_rotate %7 by %c127_i32 dim 1 : vector<32x128xf32>, i32 -> vector<32x128xf32>
    %30 = arith.select %26, %29, %7 : vector<32x128xi1>, vector<32x128xf32>
    %31 = vector.broadcast %0 : f32 to vector<32x128xf32>
    %32 = arith.mulf %28, %31 : vector<32x128xf32>
    %33 = vector.broadcast %1 : f32 to vector<32x128xf32>
    %34 = arith.mulf %30, %33 : vector<32x128xf32>
    %35 = arith.addf %32, %34 : vector<32x128xf32>
    %36 = vector.broadcast %2 : f32 to vector<32x128xf32>
    %37 = arith.addf %35, %36 : vector<32x128xf32>
    %38 = vector.broadcast %3 : f32 to vector<32x128xf32>
    %39 = arith.mulf %37, %38 : vector<32x128xf32>
    %40 = vector.broadcast %5 : f32 to vector<32x128xf32>
    %41 = arith.addf %39, %40 : vector<32x128xf32>
    %42 = vector.broadcast %4 : f32 to vector<32x128xf32>
    %43 = arith.mulf %37, %42 : vector<32x128xf32>
    %44 = vector.broadcast %6 : f32 to vector<32x128xf32>
    %45 = arith.addf %43, %44 : vector<32x128xf32>
    %46 = arith.select %26, %41, %45 : vector<32x128xi1>, vector<32x128xf32>
    %c0_7 = arith.constant 0 : index
    %c0_8 = arith.constant 0 : index
    %47 = vector.load %arg3[%c0_7, %c0_8] : memref<32x128xf32, #tpu.memory_space<vmem>>, vector<32x128xf32>
    tpu.vector_store %arg3[%c0_7, %c0_8], %46 {strides = array<i32>} : memref<32x128xf32, #tpu.memory_space<vmem>>, vector<32x128xf32>,
    return
  }
  func.func @transform_0(%arg0: i32, %arg1: memref<7xf32, #tpu.memory_space<smem>>) -> (i32, i32) {
    %c0_i32 = arith.constant 0 : i32
    %c0_i32_0 = arith.constant 0 : i32
    return %arg0, %c0_i32 : i32, i32
  }
  func.func @transform_1(%arg0: i32, %arg1: memref<7xf32, #tpu.memory_space<smem>>) -> (i32, i32) {
    %c0_i32 = arith.constant 0 : i32
    %c0_i32_0 = arith.constant 0 : i32
    return %arg0, %c0_i32 : i32, i32
  }
}

</mosaic_0001>

<bundles_post_ra>
// kernel: tpu_custom_call.1
= control target key start
LH: loop header
LB: loop body
LE: loop exit
PB: predicated region body
PF: predicated region fallthrough
CT: control target
= control target key end

     0   :  { %s307_s0 = inlined_call_operand.hbm [shape: f32[7], index: 0, kind: input, shape index: {}]   ;;  %s308_s1 = inlined_call_operand.hbm [shape: f32[32,128], index: 1, kind: input, shape index: {}]   ;;  %s309_s2 = inlined_call_operand.hbm [shape: f32[32,128], index: 2, kind: output, shape index: {}]  }
   0x1   :  { %s155_s11 = scalar_lea.hbm %s307_s0, 16 }
   0x2   :  { %p156_p0 = scmp.ne.s32.totalorder %s307_s0, %s155_s11  ;;  %p159_p1 = scmp.lt.u32.totalorder %s155_s11, %s307_s0 }
   0x4   :  { %p161_p2 = pnand %p159_p1, %p156_p0 }
   0x6   :  { %164 = shalt.err (!%p161_p2)  }
   0x7   :  { %s215_s16 = smov [#allocation3]  }
   0x8   :  { %8 = dma.hbm_to_smem %s307_s0, 16, %s215_s16, [#allocation2] }
   0x9   :  { %209 = dma.done.wait [#allocation2], 16 }
   0xa   :  { %210 = vsyncadd [#allocation2], 4294967280 }
   0xb   :  { %10 = sfence }
   0xc   :  { %11 = vsyncpa [#allocation5], 0 }
   0xd   :  { %12 = vsyncpa [#allocation6], 0  ;;  %s216_s19 = smov [#allocation4]   ;;  %s165_s23 = scalar_lea.hbm %s308_s1, 512 }
   0xe   :  { %s18_s20 = sshll.u32 %s216_s19, 4  ;;  %p166_p3 = scmp.ne.s32.totalorder %s308_s1, %s165_s23  ;;  %s19_s20 = int_to_ptr.vmem [resolvable:$true] %s18_s20 }
   0xf   :  { %p169_p4 = scmp.lt.u32.totalorder %s165_s23, %s308_s1 }
  0x11   :  { %p171_p5 = pnand %p169_p4, %p166_p3 }
  0x13   :  { %174 = shalt.err (!%p171_p5)
}
  0x14   :  { %s175_s0 = scalar_lea.vmem %s19_s20, 512  ;;  %p180_p7 = scmp.lt.s32.totalorder %s19_s20, %s19_s20 }
  0x15   :  { %p176_p6 = scmp.ne.s32.totalorder %s19_s20, %s175_s0  ;;  %p181_p8 = scmp.lt.s32.totalorder %s175_s0, %s175_s0 }
  0x17   :  { %p182_p9 = por %p181_p8, %p180_p7 }
  0x19   :  { %p183_p10 = pnand %p182_p9, %p176_p6 }
  0x1b   :  { %186 = shalt.err (!%p183_p10)
}
  0x1c   :  { %s217_s28 = smov 128   ;;  %s218_s29 = smov 8  }
  0x1d   :  { %24 = dma.hbm_to_vmem [thread:$0]  %s308_s1, 512, %s19_s20, [#allocation5], %s217_s28, %s217_s28, %s218_s29  }
  0x1e   :  { %211 = dma.done.wait [#allocation5], 512  }
  0x1f   :  { %212 = vsyncadd [#allocation5], 4294966784  ;;  %v37_v0 = vld [vmem:[#allocation4 + $0x10] sm:$0xff]  ;;  %v35_v1 = vld [vmem:[#allocation4] sm:$0xff]  ;;  %s219_s4 = smov 1   ;;  %s220_s5 = smov 127   ;;  %v39_v4 = vlaneseq }
  0x20   :  { %58 = vrot.lane.b32.xlu1 %v37_v0, %s219_s4  ;;  %54 = vrot.lane.b32.xlu0 %v35_v1, %s219_s4  ;;  %v38_v2 = vld [vmem:[#allocation4 + $0x18] sm:$0xff]  ;;  %v36_v3 = vld [vmem:[#allocation4 + $0x8] sm:$0xff]  ;;  %s28_s6 = sld [smem:[#allocation3]]  ;;  %s142_s1 = sld [smem:[#allocation3 + $0x1]] }
  0x21   :  { %v40_v5 = vand.u32 127, %v39_v4  ;;  %s143_s7 = sld [smem:[#allocation3 + $0x2]]  ;;  %s144_s8 = sld [smem:[#allocation3 + $0x3]] }
  0x22   :  { %s145_s9 = sld [smem:[#allocation3 + $0x4]]  ;;  %s146_s10 = sld [smem:[#allocation3 + $0x5]] }
  0x23   :  { %v45_v6 = vand.u32 1, %v40_v5  ;;  %s147_s11 = sld [smem:[#allocation3 + $0x6]]  ;;  %s221_s12 = smov [#allocation7]  }
  0x24   :  { %60 = vrot.lane.b32.xlu1 %v38_v2, %s219_s4  ;;  %56 = vrot.lane.b32.xlu0 %v36_v3, %s219_s4  ;;  %s130_s13 = sshll.u32 %s221_s12, 4  ;;  %s131_s13 = int_to_ptr.vmem [resolvable:$true] %s130_s13 }
  0x25   :  { %vm264_vm0 = vcmp.eq.s32.totalorder %v45_v6, 0  ;;  %s187_s14 = scalar_lea.vmem %s131_s13, 512  ;;  %p192_p12 = scmp.lt.s32.totalorder %s131_s13, %s131_s13 }
  0x26   :  { %v78_v12 = vstv %s28_s6  ;;  %v83_v15 = vstv %s142_s1  ;;  %p188_p11 = scmp.ne.s32.totalorder %s131_s13, %s187_s14  ;;  %p193_p13 = scmp.lt.s32.totalorder %s187_s14, %s187_s14 }
  0x27   :  { %v92_v24 = vstv %s143_s7  ;;  %v97_v31 = vstv %s144_s8 }
  0x28   :  { %68 = vrot.lane.b32.xlu1 %v36_v3, %s220_s5  ;;  %66 = vrot.lane.b32.xlu0 %v35_v1, %s220_s5  ;;  %v107_v32 = vstv %s145_s9  ;;  %v102_v41 = vstv %s146_s10  ;;  %p194_p0 = por %p193_p13, %p192_p12 }
  0x29   :  { %v112_v42 = vstv %s147_s11 }
  0x2a   :  { %p195_p1 = pnand %p194_p0, %p188_p11 }
  0x2c   :  { %72 = vrot.lane.b32.xlu1 %v38_v2, %s220_s5  ;;  %70 = vrot.lane.b32.xlu0 %v37_v0, %s220_s5 }
  0x92   :  { %v59_v7 = vpop.permute.xlu1 %58  ;;  %v55_v8 = vpop.permute.xlu0 %54 }
  0x93   :  { %v62_v13 = vsel %vm264_vm0, %v35_v1, %v55_v8  ;;  %v64_v25 = vsel %vm264_vm0, %v37_v0, %v59_v7 }
  0x94   :  { %v79_v20 = vmul.f32 %v78_v12, %v62_v13  ;;  %v81_v39 = vmul.f32 %v78_v12, %v64_v25 }
  0x96   :  { %v61_v10 = vpop.permute.xlu1 %60  ;;  %v57_v11 = vpop.permute.xlu0 %56 }
  0x97   :  { %v63_v14 = vsel %vm264_vm0, %v36_v3, %v57_v11  ;;  %v65_v26 = vsel %vm264_vm0, %v38_v2, %v61_v10 }
  0x98   :  { %v80_v21 = vmul.f32 %v78_v12, %v63_v14  ;;  %v82_v40 = vmul.f32 %v78_v12, %v65_v26 }
  0x9a   :  { %v69_v16 = vpop.permute.xlu1 %68  ;;  %v67_v17 = vpop.permute.xlu0 %66 }
  0x9b   :  { %v75_v18 = vsel %vm264_vm0, %v69_v16, %v36_v3  ;;  %v74_v19 = vsel %vm264_vm0, %v67_v17, %v35_v1 }
  0x9c   :  { %v85_v22 = vmul.f32 %v83_v15, %v75_v18  ;;  %v84_v23 = vmul.f32 %v83_v15, %v74_v19 }
  0x9e   :  { %v89_v27 = vadd.f32 %v85_v22, %v80_v21  ;;  %v88_v28 = vadd.f32 %v84_v23, %v79_v20  ;;  %v73_v29 = vpop.permute.xlu1 %72  ;;  %v71_v30 = vpop.permute.xlu0 %70 }
  0x9f   :  { %v77_v33 = vsel %vm264_vm0, %v73_v29, %v38_v2  ;;  %v76_v34 = vsel %vm264_vm0, %v71_v30, %v37_v0 }
  0xa0   :  { %v94_v35 = vadd.f32 %v92_v24, %v89_v27  ;;  %v93_v36 = vadd.f32 %v92_v24, %v88_v28  ;;  %v87_v37 = vmul.f32 %v83_v15, %v77_v33  ;;  %v86_v38 = vmul.f32 %v83_v15, %v76_v34 }
  0xa2   :  { %v99_v43 = vmul.f32 %v97_v31, %v94_v35  ;;  %v109_v44 = vmul.f32 %v107_v32, %v94_v35  ;;  %v98_v45 = vmul.f32 %v97_v31, %v93_v36  ;;  %v108_v46 = vmul.f32 %v107_v32, %v93_v36 }
  0xa3   :  { %v91_v47 = vadd.f32 %v87_v37, %v82_v40  ;;  %v90_v48 = vadd.f32 %v86_v38, %v81_v39 }
  0xa4   :  { %v104_v49 = vadd.f32 %v102_v41, %v99_v43  ;;  %v114_v50 = vadd.f32 %v112_v42, %v109_v44  ;;  %v103_v51 = vadd.f32 %v102_v41, %v98_v45  ;;  %v113_v52 = vadd.f32 %v112_v42, %v108_v46 }
  0xa5   :  { %v96_v53 = vadd.f32 %v92_v24, %v91_v47  ;;  %v95_v54 = vadd.f32 %v92_v24, %v90_v48 }
  0xa6   :  { %v117_v55 = vsel %vm264_vm0, %v103_v51, %v113_v52  ;;  %v118_v56 = vsel %vm264_vm0, %v104_v49, %v114_v50 }
  0xa7   :  { %v101_v57 = vmul.f32 %v97_v31, %v96_v53  ;;  %v111_v58 = vmul.f32 %v107_v32, %v96_v53  ;;  %v100_v59 = vmul.f32 %v97_v31, %v95_v54  ;;  %v110_v60 = vmul.f32 %v107_v32, %v95_v54  ;;  %121 = vst [vmem:[#allocation7] sm:$0xff] %v117_v55 }
  0xa8   :  { %122 = vst [vmem:[#allocation7 + $0x8] sm:$0xff] %v118_v56 }
  0xa9   :  { %v106_v61 = vadd.f32 %v102_v41, %v101_v57  ;;  %v116_v62 = vadd.f32 %v112_v42, %v111_v58  ;;  %v105_v63 = vadd.f32 %v102_v41, %v100_v59  ;;  %v115_v0 = vadd.f32 %v112_v42, %v110_v60 }
  0xab   :  { %v119_v1 = vsel %vm264_vm0, %v105_v63, %v115_v0  ;;  %v120_v2 = vsel %vm264_vm0, %v106_v61, %v116_v62 }
  0xac   :  { %123 = vst [vmem:[#allocation7 + $0x10] sm:$0xff] %v119_v1  ;;  %124 = vst [vmem:[#allocation7 + $0x18] sm:$0xff] %v120_v2 }
  0xad   :  { %198 = shalt.err (!%p195_p1)
}
  0xae   :  { %s199_s17 = scalar_lea.hbm %s309_s2, 512 }
  0xaf   :  { %p200_p2 = scmp.ne.s32.totalorder %s309_s2, %s199_s17  ;;  %p203_p3 = scmp.lt.u32.totalorder %s199_s17, %s309_s2 }
  0xb1   :  { %p205_p4 = pnand %p203_p3, %p200_p2 }
  0xb3   :  { %208 = shalt.err (!%p205_p4)
}
  0xb4   :  { %136 = dma.vmem_to_hbm [thread:$0]  %s131_s13, 512, %s309_s2, [#allocation6], %s217_s28, %s217_s28, %s218_s29  }
  0xb5   :  { %213 = dma.done.wait [#allocation6], 512  }
  0xb6   :  { %214 = vsyncadd [#allocation6], 4294966784 }
  0xb7   :  { %140 = vsyncpa [#allocation5], 1 }
  0xb8   :  { %141 = vsyncpa [#allocation6], 1 }

</bundles_post_ra>
